<compile_context>
chip_gen: v5e
topology: v5e:2x2
jax: 0.10.0
libtpu: 0.0.40
codegen_flags: <defaults>
</compile_context>

<pallas_src>
import functools

import jax
import jax.numpy as jnp
from jax import lax
from jax.experimental import pallas as pl
from jax.experimental.pallas import tpu as pltpu

LANE = 128  # embedding width (100) padded up to one full lane tile


def _conv_bias_relu_kernel(x_ref, w_ref, b_ref, o_ref, *, C, KH, Hout):
    """Fused conv (kernel spans full width) + bias + ReLU for one batch element.

    x_ref: (1, C, Hp, LANE)  bf16  -- height/width padded input slab
    w_ref: (C, KH, LANE, O)  bf16  -- resident weights
    b_ref: (1, O)            f32
    o_ref: (1, O, Hout)      f32   -- lane-dense store (Hout on lanes)
    """
    O = b_ref.shape[1]
    acc = jnp.zeros((Hout, O), jnp.float32)
    # Reduction over (channel, kernel-height) as shifted bf16 matmuls on the
    # MXU with f32 accumulation; this replaces the im2col GEMM.
    for c in range(C):
        xc = x_ref[0, c]                              # (Hp, LANE) bf16
        for kh in range(KH):
            acc += jnp.dot(
                xc[kh:kh + Hout, :],                  # (Hout, LANE) bf16
                w_ref[c, kh],                         # (LANE, O)    bf16
                preferred_element_type=jnp.float32)
    acc = jnp.maximum(acc + b_ref[...], 0.0)          # bias + ReLU in f32
    o_ref[0] = acc.T                                  # (O, Hout): lane-dense


def convlayer_forward(x, weight, bias, num_words):
    """x: (N, C, H, 100); weight: (O, C, num_words, 100); bias: (O,)
    -> (N, O, Hout, 1) float32, matching the PyTorch module's forward."""
    N, C, H, W = x.shape
    O, Cw, KH, KW = weight.shape
    assert Cw == C and KH == num_words and KW == W, (x.shape, weight.shape)

    # F.pad(x, (0,0,1,1)) / F.pad(x, (0,0,2,2)): pad the height dim only.
    ph = {3: 1, 5: 2}.get(num_words, 0)
    Hp = H + 2 * ph
    Hout = Hp - KH + 1            # Wout = W - KW + 1 == 1 (kernel spans width)

    wpad = LANE - W               # 100 -> 128 lane alignment (zero pad is inert)
    # Single fused pad + cast pass over x; no im2col duplication in HBM.
    x_p = jnp.pad(x, ((0, 0), (0, 0), (ph, ph), (0, wpad))).astype(jnp.bfloat16)
    # (O, C, KH, W) -> (C, KH, LANE, O), bf16 (weights are tiny).
    w_k = jnp.pad(weight, ((0, 0), (0, 0), (0, 0), (0, wpad)))
    w_k = w_k.transpose(1, 2, 3, 0).astype(jnp.bfloat16)
    b2d = bias.reshape(1, O).astype(jnp.float32)

    kernel = functools.partial(_conv_bias_relu_kernel, C=C, KH=KH, Hout=Hout)

    out = pl.pallas_call(
        kernel,
        out_shape=jax.ShapeDtypeStruct((N, O, Hout), jnp.float32),
        grid=(N,),
        in_specs=[
            pl.BlockSpec((1, C, Hp, LANE), lambda n: (n, 0, 0, 0)),  # per-batch slab
            pl.BlockSpec((C, KH, LANE, O), lambda n: (0, 0, 0, 0)),  # resident weights
            pl.BlockSpec((1, O), lambda n: (0, 0)),                  # resident bias
        ],
        out_specs=pl.BlockSpec((1, O, Hout), lambda n: (n, 0, 0)),
        compiler_params=pltpu.CompilerParams(
            dimension_semantics=("parallel",),       # megacore sharding on v7x
            vmem_limit_bytes=32 * 1024 * 1024,       # safe on v7x's 64 MiB VMEM
        ),
    )(x_p, w_k, b2d)

    # (N, O, Hout) -> (N, O, Hout, 1): nn.Conv2d NCHW output with Wout == 1.
    return out[..., None]


if __name__ == "__main__":
    key = jax.random.PRNGKey(0)
    k_x, k_w, k_b = jax.random.split(key, 3)

    # Small shapes consistent with the module: in_channels=4, out_channels=8,
    # num_words=3 (kernel height), sentence length H=8, embedding width 100.
    N, C, O, H, num_words, EMB_W = 2, 4, 8, 8, 3, 100

    x = jax.random.normal(k_x, (N, C, H, EMB_W), dtype=jnp.float32)
    # The module's __init__ zero-initializes the weight (output would just be
    # ReLU(bias)); use small random weights of the same shape so the conv path
    # is actually exercised.
    weight = jax.random.normal(k_w, (O, C, num_words, EMB_W), dtype=jnp.float32) * 0.02
    bias = jax.random.uniform(k_b, (O,), dtype=jnp.float32) * 0.1

    out = jax.block_until_ready(convlayer_forward(x, weight, bias, num_words))

    # Reference: plain-JAX conv on bf16-rounded operands (the kernel does its
    # matmuls in bf16 with f32 accumulation), same pad / bias / ReLU semantics.
    x_r = x.astype(jnp.bfloat16).astype(jnp.float32)
    w_r = weight.astype(jnp.bfloat16).astype(jnp.float32)
    x_pad = jnp.pad(x_r, ((0, 0), (0, 0), (1, 1), (0, 0)))
    ref = lax.conv_general_dilated(
        x_pad, w_r, window_strides=(1, 1), padding="VALID",
        dimension_numbers=("NCHW", "OIHW", "NCHW"),
        precision=lax.Precision.HIGHEST)
    ref = jnp.maximum(ref + bias[None, :, None, None], 0.0)

    assert out.shape == ref.shape == (N, O, H, 1), (out.shape, ref.shape)
    max_err = float(jnp.max(jnp.abs(out - ref)))
    assert jnp.allclose(out, ref, atol=2e-3, rtol=2e-3), max_err
    print("KERNEL_OK")
</pallas_src>

<mosaic_0001>
module attributes {stable_mosaic.version = 11 : i64} {
  func.func @_conv_bias_relu_kernel(%arg0: i32, %arg1: memref<1x4x10x128xbf16, #tpu.memory_space<vmem>>, %arg2: memref<4x3x128x8xbf16, #tpu.memory_space<vmem>>, %arg3: memref<1x8xf32, #tpu.memory_space<vmem>>, %arg4: memref<1x8x8xf32, #tpu.memory_space<vmem>>) attributes {dimension_semantics = [#tpu.dimension_semantics<parallel>], iteration_bounds = array<i64: 2>, scalar_prefetch = 0 : i64, scratch_operands = 0 : i64, tpu.core_type = #tpu.core_type<tc>, window_params = [{transform_indices = @transform_0, window_bounds = array<i64: 1, 4, 10, 128>}, {pipeline_mode = #tpu.pipeline_mode<synchronous>, transform_indices = @transform_1, window_bounds = array<i64: 4, 3, 128, 8>}, {pipeline_mode = #tpu.pipeline_mode<synchronous>, transform_indices = @transform_2, window_bounds = array<i64: 1, 8>}, {transform_indices = @transform_3, window_bounds = array<i64: 1, 8, 8>}]} {
    %cst = arith.constant 0.000000e+00 : f32
    %0 = vector.broadcast %cst : f32 to vector<8x8xf32>
    %c0 = arith.constant 0 : index
    %c0_0 = arith.constant 0 : index
    %c0_1 = arith.constant 0 : index
    %c0_2 = arith.constant 0 : index
    %1 = vector.load %arg1[%c0, %c0_0, %c0_1, %c0_2] : memref<1x4x10x128xbf16, #tpu.memory_space<vmem>>, vector<1x1x10x128xbf16>
    %2 = vector.shape_cast %1 : vector<1x1x10x128xbf16> to vector<10x128xbf16>
    %3 = vector.extract_strided_slice %2 {offsets = [0, 0], sizes = [8, 128], strides = [1, 1]} : vector<10x128xbf16> to vector<8x128xbf16>
    %c0_3 = arith.constant 0 : index
    %c0_4 = arith.constant 0 : index
    %c0_5 = arith.constant 0 : index
    %c0_6 = arith.constant 0 : index
    %4 = vector.load %arg2[%c0_3, %c0_4, %c0_5, %c0_6] : memref<4x3x128x8xbf16, #tpu.memory_space<vmem>>, vector<1x1x128x8xbf16>
    %5 = vector.shape_cast %4 : vector<1x1x128x8xbf16> to vector<128x8xbf16>
    %cst_7 = arith.constant dense<0.000000e+00> : vector<8x8xf32>
    %6 = tpu.matmul %3, %5, %cst_7 {dimension_numbers = #tpu.dot_dimension_numbers<[1], [0], [0], [1], [0, 0, 1, 1], [], []>} : vector<8x128xbf16>, vector<128x8xbf16>, vector<8x8xf32> -> vector<8x8xf32>
    %7 = arith.addf %0, %6 : vector<8x8xf32>
    %8 = vector.extract_strided_slice %2 {offsets = [1, 0], sizes = [8, 128], strides = [1, 1]} : vector<10x128xbf16> to vector<8x128xbf16>
    %c0_8 = arith.constant 0 : index
    %c1 = arith.constant 1 : index
    %c0_9 = arith.constant 0 : index
    %c0_10 = arith.constant 0 : index
    %9 = vector.load %arg2[%c0_8, %c1, %c0_9, %c0_10] : memref<4x3x128x8xbf16, #tpu.memory_space<vmem>>, vector<1x1x128x8xbf16>
    %10 = vector.shape_cast %9 : vector<1x1x128x8xbf16> to vector<128x8xbf16>
    %cst_11 = arith.constant dense<0.000000e+00> : vector<8x8xf32>
    %11 = tpu.matmul %8, %10, %cst_11 {dimension_numbers = #tpu.dot_dimension_numbers<[1], [0], [0], [1], [0, 0, 1, 1], [], []>} : vector<8x128xbf16>, vector<128x8xbf16>, vector<8x8xf32> -> vector<8x8xf32>
    %12 = arith.addf %7, %11 : vector<8x8xf32>
    %13 = vector.extract_strided_slice %2 {offsets = [2, 0], sizes = [8, 128], strides = [1, 1]} : vector<10x128xbf16> to vector<8x128xbf16>
    %c0_12 = arith.constant 0 : index
    %c2 = arith.constant 2 : index
    %c0_13 = arith.constant 0 : index
    %c0_14 = arith.constant 0 : index
    %14 = vector.load %arg2[%c0_12, %c2, %c0_13, %c0_14] : memref<4x3x128x8xbf16, #tpu.memory_space<vmem>>, vector<1x1x128x8xbf16>
    %15 = vector.shape_cast %14 : vector<1x1x128x8xbf16> to vector<128x8xbf16>
    %cst_15 = arith.constant dense<0.000000e+00> : vector<8x8xf32>
    %16 = tpu.matmul %13, %15, %cst_15 {dimension_numbers = #tpu.dot_dimension_numbers<[1], [0], [0], [1], [0, 0, 1, 1], [], []>} : vector<8x128xbf16>, vector<128x8xbf16>, vector<8x8xf32> -> vector<8x8xf32>
    %17 = arith.addf %12, %16 : vector<8x8xf32>
    %c0_16 = arith.constant 0 : index
    %c1_17 = arith.constant 1 : index
    %c0_18 = arith.constant 0 : index
    %c0_19 = arith.constant 0 : index
    %18 = vector.load %arg1[%c0_16, %c1_17, %c0_18, %c0_19] : memref<1x4x10x128xbf16, #tpu.memory_space<vmem>>, vector<1x1x10x128xbf16>
    %19 = vector.shape_cast %18 : vector<1x1x10x128xbf16> to vector<10x128xbf16>
    %20 = vector.extract_strided_slice %19 {offsets = [0, 0], sizes = [8, 128], strides = [1, 1]} : vector<10x128xbf16> to vector<8x128xbf16>
    %c1_20 = arith.constant 1 : index
    %c0_21 = arith.constant 0 : index
    %c0_22 = arith.constant 0 : index
    %c0_23 = arith.constant 0 : index
    %21 = vector.load %arg2[%c1_20, %c0_21, %c0_22, %c0_23] : memref<4x3x128x8xbf16, #tpu.memory_space<vmem>>, vector<1x1x128x8xbf16>
    %22 = vector.shape_cast %21 : vector<1x1x128x8xbf16> to vector<128x8xbf16>
    %cst_24 = arith.constant dense<0.000000e+00> : vector<8x8xf32>
    %23 = tpu.matmul %20, %22, %cst_24 {dimension_numbers = #tpu.dot_dimension_numbers<[1], [0], [0], [1], [0, 0, 1, 1], [], []>} : vector<8x128xbf16>, vector<128x8xbf16>, vector<8x8xf32> -> vector<8x8xf32>
    %24 = arith.addf %17, %23 : vector<8x8xf32>
    %25 = vector.extract_strided_slice %19 {offsets = [1, 0], sizes = [8, 128], strides = [1, 1]} : vector<10x128xbf16> to vector<8x128xbf16>
    %c1_25 = arith.constant 1 : index
    %c1_26 = arith.constant 1 : index
    %c0_27 = arith.constant 0 : index
    %c0_28 = arith.constant 0 : index
    %26 = vector.load %arg2[%c1_25, %c1_26, %c0_27, %c0_28] : memref<4x3x128x8xbf16, #tpu.memory_space<vmem>>, vector<1x1x128x8xbf16>
    %27 = vector.shape_cast %26 : vector<1x1x128x8xbf16> to vector<128x8xbf16>
    %cst_29 = arith.constant dense<0.000000e+00> : vector<8x8xf32>
    %28 = tpu.matmul %25, %27, %cst_29 {dimension_numbers = #tpu.dot_dimension_numbers<[1], [0], [0], [1], [0, 0, 1, 1], [], []>} : vector<8x128xbf16>, vector<128x8xbf16>, vector<8x8xf32> -> vector<8x8xf32>
    %29 = arith.addf %24, %28 : vector<8x8xf32>
    %30 = vector.extract_strided_slice %19 {offsets = [2, 0], sizes = [8, 128], strides = [1, 1]} : vector<10x128xbf16> to vector<8x128xbf16>
    %c1_30 = arith.constant 1 : index
    %c2_31 = arith.constant 2 : index
    %c0_32 = arith.constant 0 : index
    %c0_33 = arith.constant 0 : index
    %31 = vector.load %arg2[%c1_30, %c2_31, %c0_32, %c0_33] : memref<4x3x128x8xbf16, #tpu.memory_space<vmem>>, vector<1x1x128x8xbf16>
    %32 = vector.shape_cast %31 : vector<1x1x128x8xbf16> to vector<128x8xbf16>
    %cst_34 = arith.constant dense<0.000000e+00> : vector<8x8xf32>
    %33 = tpu.matmul %30, %32, %cst_34 {dimension_numbers = #tpu.dot_dimension_numbers<[1], [0], [0], [1], [0, 0, 1, 1], [], []>} : vector<8x128xbf16>, vector<128x8xbf16>, vector<8x8xf32> -> vector<8x8xf32>
    %34 = arith.addf %29, %33 : vector<8x8xf32>
    %c0_35 = arith.constant 0 : index
    %c2_36 = arith.constant 2 : index
    %c0_37 = arith.constant 0 : index
    %c0_38 = arith.constant 0 : index
    %35 = vector.load %arg1[%c0_35, %c2_36, %c0_37, %c0_38] : memref<1x4x10x128xbf16, #tpu.memory_space<vmem>>, vector<1x1x10x128xbf16>
    %36 = vector.shape_cast %35 : vector<1x1x10x128xbf16> to vector<10x128xbf16>
    %37 = vector.extract_strided_slice %36 {offsets = [0, 0], sizes = [8, 128], strides = [1, 1]} : vector<10x128xbf16> to vector<8x128xbf16>
    %c2_39 = arith.constant 2 : index
    %c0_40 = arith.constant 0 : index
    %c0_41 = arith.constant 0 : index
    %c0_42 = arith.constant 0 : index
    %38 = vector.load %arg2[%c2_39, %c0_40, %c0_41, %c0_42] : memref<4x3x128x8xbf16, #tpu.memory_space<vmem>>, vector<1x1x128x8xbf16>
    %39 = vector.shape_cast %38 : vector<1x1x128x8xbf16> to vector<128x8xbf16>
    %cst_43 = arith.constant dense<0.000000e+00> : vector<8x8xf32>
    %40 = tpu.matmul %37, %39, %cst_43 {dimension_numbers = #tpu.dot_dimension_numbers<[1], [0], [0], [1], [0, 0, 1, 1], [], []>} : vector<8x128xbf16>, vector<128x8xbf16>, vector<8x8xf32> -> vector<8x8xf32>
    %41 = arith.addf %34, %40 : vector<8x8xf32>
    %42 = vector.extract_strided_slice %36 {offsets = [1, 0], sizes = [8, 128], strides = [1, 1]} : vector<10x128xbf16> to vector<8x128xbf16>
    %c2_44 = arith.constant 2 : index
    %c1_45 = arith.constant 1 : index
    %c0_46 = arith.constant 0 : index
    %c0_47 = arith.constant 0 : index
    %43 = vector.load %arg2[%c2_44, %c1_45, %c0_46, %c0_47] : memref<4x3x128x8xbf16, #tpu.memory_space<vmem>>, vector<1x1x128x8xbf16>
    %44 = vector.shape_cast %43 : vector<1x1x128x8xbf16> to vector<128x8xbf16>
    %cst_48 = arith.constant dense<0.000000e+00> : vector<8x8xf32>
    %45 = tpu.matmul %42, %44, %cst_48 {dimension_numbers = #tpu.dot_dimension_numbers<[1], [0], [0], [1], [0, 0, 1, 1], [], []>} : vector<8x128xbf16>, vector<128x8xbf16>, vector<8x8xf32> -> vector<8x8xf32>
    %46 = arith.addf %41, %45 : vector<8x8xf32>
    %47 = vector.extract_strided_slice %36 {offsets = [2, 0], sizes = [8, 128], strides = [1, 1]} : vector<10x128xbf16> to vector<8x128xbf16>
    %c2_49 = arith.constant 2 : index
    %c2_50 = arith.constant 2 : index
    %c0_51 = arith.constant 0 : index
    %c0_52 = arith.constant 0 : index
    %48 = vector.load %arg2[%c2_49, %c2_50, %c0_51, %c0_52] : memref<4x3x128x8xbf16, #tpu.memory_space<vmem>>, vector<1x1x128x8xbf16>
    %49 = vector.shape_cast %48 : vector<1x1x128x8xbf16> to vector<128x8xbf16>
    %cst_53 = arith.constant dense<0.000000e+00> : vector<8x8xf32>
    %50 = tpu.matmul %47, %49, %cst_53 {dimension_numbers = #tpu.dot_dimension_numbers<[1], [0], [0], [1], [0, 0, 1, 1], [], []>} : vector<8x128xbf16>, vector<128x8xbf16>, vector<8x8xf32> -> vector<8x8xf32>
    %51 = arith.addf %46, %50 : vector<8x8xf32>
    %c0_54 = arith.constant 0 : index
    %c3 = arith.constant 3 : index
    %c0_55 = arith.constant 0 : index
    %c0_56 = arith.constant 0 : index
    %52 = vector.load %arg1[%c0_54, %c3, %c0_55, %c0_56] : memref<1x4x10x128xbf16, #tpu.memory_space<vmem>>, vector<1x1x10x128xbf16>
    %53 = vector.shape_cast %52 : vector<1x1x10x128xbf16> to vector<10x128xbf16>
    %54 = vector.extract_strided_slice %53 {offsets = [0, 0], sizes = [8, 128], strides = [1, 1]} : vector<10x128xbf16> to vector<8x128xbf16>
    %c3_57 = arith.constant 3 : index
    %c0_58 = arith.constant 0 : index
    %c0_59 = arith.constant 0 : index
    %c0_60 = arith.constant 0 : index
    %55 = vector.load %arg2[%c3_57, %c0_58, %c0_59, %c0_60] : memref<4x3x128x8xbf16, #tpu.memory_space<vmem>>, vector<1x1x128x8xbf16>
    %56 = vector.shape_cast %55 : vector<1x1x128x8xbf16> to vector<128x8xbf16>
    %cst_61 = arith.constant dense<0.000000e+00> : vector<8x8xf32>
    %57 = tpu.matmul %54, %56, %cst_61 {dimension_numbers = #tpu.dot_dimension_numbers<[1], [0], [0], [1], [0, 0, 1, 1], [], []>} : vector<8x128xbf16>, vector<128x8xbf16>, vector<8x8xf32> -> vector<8x8xf32>
    %58 = arith.addf %51, %57 : vector<8x8xf32>
    %59 = vector.extract_strided_slice %53 {offsets = [1, 0], sizes = [8, 128], strides = [1, 1]} : vector<10x128xbf16> to vector<8x128xbf16>
    %c3_62 = arith.constant 3 : index
    %c1_63 = arith.constant 1 : index
    %c0_64 = arith.constant 0 : index
    %c0_65 = arith.constant 0 : index
    %60 = vector.load %arg2[%c3_62, %c1_63, %c0_64, %c0_65] : memref<4x3x128x8xbf16, #tpu.memory_space<vmem>>, vector<1x1x128x8xbf16>
    %61 = vector.shape_cast %60 : vector<1x1x128x8xbf16> to vector<128x8xbf16>
    %cst_66 = arith.constant dense<0.000000e+00> : vector<8x8xf32>
    %62 = tpu.matmul %59, %61, %cst_66 {dimension_numbers = #tpu.dot_dimension_numbers<[1], [0], [0], [1], [0, 0, 1, 1], [], []>} : vector<8x128xbf16>, vector<128x8xbf16>, vector<8x8xf32> -> vector<8x8xf32>
    %63 = arith.addf %58, %62 : vector<8x8xf32>
    %64 = vector.extract_strided_slice %53 {offsets = [2, 0], sizes = [8, 128], strides = [1, 1]} : vector<10x128xbf16> to vector<8x128xbf16>
    %c3_67 = arith.constant 3 : index
    %c2_68 = arith.constant 2 : index
    %c0_69 = arith.constant 0 : index
    %c0_70 = arith.constant 0 : index
    %65 = vector.load %arg2[%c3_67, %c2_68, %c0_69, %c0_70] : memref<4x3x128x8xbf16, #tpu.memory_space<vmem>>, vector<1x1x128x8xbf16>
    %66 = vector.shape_cast %65 : vector<1x1x128x8xbf16> to vector<128x8xbf16>
    %cst_71 = arith.constant dense<0.000000e+00> : vector<8x8xf32>
    %67 = tpu.matmul %64, %66, %cst_71 {dimension_numbers = #tpu.dot_dimension_numbers<[1], [0], [0], [1], [0, 0, 1, 1], [], []>} : vector<8x128xbf16>, vector<128x8xbf16>, vector<8x8xf32> -> vector<8x8xf32>
    %68 = arith.addf %63, %67 : vector<8x8xf32>
    %c0_72 = arith.constant 0 : index
    %c0_73 = arith.constant 0 : index
    %69 = vector.load %arg3[%c0_72, %c0_73] : memref<1x8xf32, #tpu.memory_space<vmem>>, vector<1x8xf32>
    %70 = vector.broadcast %69 : vector<1x8xf32> to vector<8x8xf32>
    %71 = arith.addf %68, %70 : vector<8x8xf32>
    %cst_74 = arith.constant 0.000000e+00 : f32
    %72 = vector.broadcast %cst_74 : f32 to vector<8x8xf32>
    %73 = arith.maximumf %71, %72 : vector<8x8xf32>
    %74 = tpu.transpose %73, [1, 0] : vector<8x8xf32> -> vector<8x8xf32>
    %c0_75 = arith.constant 0 : index
    %c0_76 = arith.constant 0 : index
    %c0_77 = arith.constant 0 : index
    %75 = vector.load %arg4[%c0_75, %c0_76, %c0_77] : memref<1x8x8xf32, #tpu.memory_space<vmem>>, vector<1x8x8xf32>
    %76 = vector.shape_cast %75 : vector<1x8x8xf32> to vector<8x8xf32>
    %77 = vector.shape_cast %74 : vector<8x8xf32> to vector<1x8x8xf32>
    tpu.vector_store %arg4[%c0_75, %c0_76, %c0_77], %77 {strides = array<i32>} : memref<1x8x8xf32, #tpu.memory_space<vmem>>, vector<1x8x8xf32>,
    return
  }
  func.func @transform_0(%arg0: i32) -> (i32, i32, i32, i32) {
    %c0_i32 = arith.constant 0 : i32
    %c0_i32_0 = arith.constant 0 : i32
    %c0_i32_1 = arith.constant 0 : i32
    %c0_i32_2 = arith.constant 0 : i32
    return %arg0, %c0_i32, %c0_i32_0, %c0_i32_1 : i32, i32, i32, i32
  }
  func.func @transform_1(%arg0: i32) -> (i32, i32, i32, i32) {
    %c0_i32 = arith.constant 0 : i32
    %c0_i32_0 = arith.constant 0 : i32
    %c0_i32_1 = arith.constant 0 : i32
    %c0_i32_2 = arith.constant 0 : i32
    %c0_i32_3 = arith.constant 0 : i32
    return %c0_i32, %c0_i32_0, %c0_i32_1, %c0_i32_2 : i32, i32, i32, i32
  }
  func.func @transform_2(%arg0: i32) -> (i32, i32) {
    %c0_i32 = arith.constant 0 : i32
    %c0_i32_0 = arith.constant 0 : i32
    %c0_i32_1 = arith.constant 0 : i32
    return %c0_i32, %c0_i32_0 : i32, i32
  }
  func.func @transform_3(%arg0: i32) -> (i32, i32, i32) {
    %c0_i32 = arith.constant 0 : i32
    %c0_i32_0 = arith.constant 0 : i32
    %c0_i32_1 = arith.constant 0 : i32
    return %arg0, %c0_i32, %c0_i32_0 : i32, i32, i32
  }
}

</mosaic_0001>

<bundles_post_ra>
// kernel: tpu_custom_call.1
= control target key start
LH: loop header
LB: loop body
LE: loop exit
PB: predicated region body
PF: predicated region fallthrough
CT: control target
= control target key end

     0   :  { %8 = vsyncpa [#allocation3], 0  ;;  %s2514_s0 = inlined_call_operand.vmem [shape: bf16[2,4,10,128], index: 0, kind: input, shape index: {}]   ;;  %s2515_s1 = inlined_call_operand.vmem [shape: bf16[4,3,128,8], index: 1, kind: input, shape index: {}]   ;;  %s2516_s2 = inlined_call_operand.vmem [shape: f32[1,8], index: 2, kind: input, shape index: {}]   ;;  %s2517_s3 = inlined_call_operand.hbm [shape: f32[2,8,8], index: 3, kind: output, shape index: {}]  }
   0x1   :  { %10 = vsyncpa [#allocation3 + $0x1], 0  ;;  %s2119_s12 = smov 0   ;;  %s2121_s13 = smov 0  }
   0x2   :  { %s2123_s14 = smov 0   ;;  %s2125_s15 = smov 0  }
   0x3 LB: > { %s2140_s16 = sadd.s32 4294967295, %s2097_s15   ;;  %s1300_s17 = sadd.s32 4294967294, %s2097_s15   ;;  %s2097_s15 = sphi %s2125_s15, %s2523_s15   ;;  %s2093_s14 = sphi %s2123_s14, %s2522_s14   ;;  %s2089_s13 = sphi %s2121_s13, %s2521_s13   ;;  %s2085_s12 = sphi %s2119_s12, %s2520_s12  }
   0x4   : > { %s2144_s18 = sadd.s32 1, %s2097_s15   ;;  %s91_s19 = sadd.s32 1, %s2093_s14 }
   0x5   : > { %s88_s20 = ssub.s32 %s2097_s15, %s2144_s18  ;;  %p101_p0 = scmp.ne.s32.totalorder %s2093_s14, %s2089_s13 }
   0x6   : > { %p89_p1 = scmp.eq.s32.totalorder %s88_s20, 0  ;;  %p102_p2 = scmp.eq.s32.totalorder %s2140_s16, 1 }
   0x7   : > { %p107_p3 = scmp.ne.s32.totalorder %s2089_s13, %s2085_s12  ;;  %p108_p4 = scmp.eq.s32.totalorder %s1300_s17, 1 }
   0x8   : > { %s2155_s21 = scalar_select %p89_p1, %s2093_s14, %s91_s19  }
   0x9   : > { %p2157_p5 = por %p102_p2, %p101_p0  ;;  %p2161_p6 = por %p108_p4, %p107_p3 }
   0xa   : > { %p1303_p7 = scmp.ge.s32.totalorder %s2097_s15, 1  ;;  %p140_p8 = scmp.lt.s32.totalorder %s2097_s15, 3 }
   0xc   : > { %p141_p9 = pnand %p1303_p7, %p140_p8 }
   0xd   : > { %p164_p10 = scmp.lt.s32.totalorder (!%p141_p9), %s2140_s16, 1  ;;  %s161_s6 = sand.u32 (!%p141_p9), 1, %s2089_s13  }
   0xe   : > { %144 = sbr.rel (%p141_p9) target bundleno = 425 (0x1a9), region = 32  ;;  %s1304_s7 = sshll.u32 (!%p141_p9), %s161_s6, 3 }
   0xf   : > { %s1890_s8 = sshll.u32 (!%p141_p9), %s2140_s16, 3  ;;  %s1226_s24 = scalar_lea.sflag (!%p141_p9), [#allocation3], %s161_s6 }
  0x10   : > { %s1236_s11 = scalar_lea.hbm (!%p141_p9), %s2517_s3, %s1890_s8  ;;  %s2055_s29 = scalar_lea.hbm (!%p141_p9), %s2517_s3, 16 }
  0x11   : > { %s1240_s20 = sshll.u32 (!%p141_p9), %s1236_s11, 4  ;;  %s1241_s20 = int_to_ptr.hbm [resolvable:$true] %s1240_s20 }
  0x12   : > { %s2049_s25 = sshra.s32 (!%p141_p9), %s1241_s20, 4  ;;  %s2050_s25 = int_to_ptr.hbm [resolvable:$true] %s2049_s25 }
  0x13   : > { %v1910_v0 = vld [vmem:[%s2515_s1 + $0x78] sm:$0xff]  ;;  %v1909_v4 = vld [vmem:[%s2515_s1 + $0x70] sm:$0xff]  ;;  %v1908_v8 = vld [vmem:[%s2515_s1 + $0x68] sm:$0xff]  ;;  %s165_s30 = scalar_select %p164_p10, %s2140_s16, 1  ;;  %vm1223_vm0 = vcmask 64512  }
  0x14   : > { %v1902_v1 = vld [vmem:[%s2515_s1 + $0x38] sm:$0xff]  ;;  %265 = vmatpush.bf16.msra.mxu0 %v1910_v0  ;;  %v1901_v5 = vld [vmem:[%s2515_s1 + $0x30] sm:$0xff]  ;;  %v1900_v9 = vld [vmem:[%s2515_s1 + $0x28] sm:$0xff]  ;;  %s2051_s26 = scalar_lea.hbm %s2050_s25, 8  ;;  %p2056_p0 = scmp.lt.s32.totalorder %s2050_s25, %s2517_s3 }
  0x15   : > { %v1918_v2 = vld [vmem:[%s2515_s1 + $0xb8] sm:$0xff]  ;;  %326 = vmatpush.bf16.msra.mxu1 %v1902_v1  ;;  %v1917_v6 = vld [vmem:[%s2515_s1 + $0xb0] sm:$0xff]  ;;  %v1916_v10 = vld [vmem:[%s2515_s1 + $0xa8] sm:$0xff]  ;;  %s1893_s17 = sshll.u32 %s165_s30, 5  ;;  %p2052_p11 = scmp.ne.s32.totalorder %s2050_s25, %s2051_s26 }
  0x16   : > { %v1927_v3 = vld [vmem:[%s2515_s1 + $0xf8] sm:$0xff]  ;;  %406 = vmatpush.bf16.msra.mxu2 %v1918_v2  ;;  %v1926_v7 = vld [vmem:[%s2515_s1 + $0xf0] sm:$0xff]  ;;  %v1925_v11 = vld [vmem:[%s2515_s1 + $0xe8] sm:$0xff]  ;;  %s2226_s28 = scalar_lea.vmem %s2514_s0, %s1893_s17  ;;  %s163_s17 = scalar_lea.vmem [#allocation2], %s1304_s7 }
  0x17   : > { %488 = vmatpush.bf16.msra.mxu3 %v1927_v3  ;;  %v1907_v12 = vld [vmem:[%s2515_s1 + $0x60] sm:$0xff]  ;;  %v1906_v16 = vld [vmem:[%s2515_s1 + $0x58] sm:$0xff]  ;;  %v1905_v22 = vld [vmem:[%s2515_s1 + $0x50] sm:$0xff]  ;;  %s1238_s19 = sshll.u32 %s163_s17, 4  ;;  %p2053_p12 = pnand %p2052_p11, %p2157_p5  ;;  %s1239_s19 = int_to_ptr.vmem [resolvable:$true] %s1238_s19 }
  0x18   : > { %266 = vmatpush.bf16.msra.mxu0 %v1909_v4  ;;  %v1899_v13 = vld [vmem:[%s2515_s1 + $0x20] sm:$0xff]  ;;  %v1898_v17 = vld [vmem:[%s2515_s1 + $0x18] sm:$0xff]  ;;  %v1897_v23 = vld [vmem:[%s2515_s1 + $0x10] sm:$0xff]  ;;  %p2057_p1 = scmp.lt.s32.totalorder %s2055_s29, %s2051_s26 }
  0x19   : > { %327 = vmatpush.bf16.msra.mxu1 %v1901_v5  ;;  %v1915_v14 = vld [vmem:[%s2515_s1 + $0xa0] sm:$0xff]  ;;  %v1914_v18 = vld [vmem:[%s2515_s1 + $0x98] sm:$0xff]  ;;  %v1913_v25 = vld [vmem:[%s2515_s1 + $0x90] sm:$0xff]  ;;  %p2054_p13 = pneg %p2053_p12 }
  0x1a   : > { %407 = vmatpush.bf16.msra.mxu2 %v1917_v6  ;;  %v1924_v15 = vld [vmem:[%s2515_s1 + $0xe0] sm:$0xff]  ;;  %v1923_v19 = vld [vmem:[%s2515_s1 + $0xd8] sm:$0xff]  ;;  %v1922_v26 = vld [vmem:[%s2515_s1 + $0xd0] sm:$0xff]  ;;  %p2058_p2 = por %p2057_p1, %p2056_p0 }
  0x1b   : > { %489 = vmatpush.bf16.msra.mxu3 %v1926_v7  ;;  %v1325_v20 = vld [vmem:[%s2226_s28] sm:$0xf]  ;;  %v1894_v21 = vld [vmem:[%s2226_s28] sm:$0x10]  ;;  %v1904_v27 = vld [vmem:[%s2515_s1 + $0x48] sm:$0xff] }
  0x1c   : > { %267 = vmatpush.bf16.msra.mxu0 %v1908_v8  ;;  %v1326_v24 = vor.u32 %v1894_v21, %v1325_v20  ;;  %v1896_v28 = vld [vmem:[%s2515_s1 + $0x8] sm:$0xff]  ;;  %v1903_v32 = vld [vmem:[%s2515_s1 + $0x40] sm:$0xff]  ;;  %v1935_v38 = vld [vmem:[%s2515_s1 + $0x138] sm:$0xff]  ;;  %p2059_p3 = pnand %p2058_p2, %p2054_p13 }
  0x1d   : > { %328 = vmatpush.bf16.msra.mxu1 %v1900_v9  ;;  %v1912_v30 = vld [vmem:[%s2515_s1 + $0x88] sm:$0xff]  ;;  %v1895_v33 = vld [vmem:[%s2515_s1] sm:$0xff]  ;;  %v1943_v39 = vld [vmem:[%s2515_s1 + $0x178] sm:$0xff] }
  0x1e   : > { %408 = vmatpush.bf16.msra.mxu2 %v1916_v10  ;;  %v212_v29 = vshll.u32 %v1326_v24, 16  ;;  %v1921_v31 = vld [vmem:[%s2515_s1 + $0xc8] sm:$0xff]  ;;  %v210_v34 = vshrl.u32 %v1326_v24, 16  ;;  %v1911_v36 = vld [vmem:[%s2515_s1 + $0x80] sm:$0xff]  ;;  %v1952_v40 = vld [vmem:[%s2515_s1 + $0x1b8] sm:$0xff]  ;;  %v356_v42 = vrot.slane %v1326_v24, 1 }
  0x1f   : > { %490 = vmatpush.bf16.msra.mxu3 %v1925_v11  ;;  %v1920_v37 = vld [vmem:[%s2515_s1 + $0xc0] sm:$0xff]  ;;  %v1960_v41 = vld [vmem:[%s2515_s1 + $0x1f8] sm:$0xff]  ;;  %v1934_v44 = vld [vmem:[%s2515_s1 + $0x130] sm:$0xff] }
  0x20   : > { %268 = vmatpush.bf16.msra.mxu0 %v1907_v12  ;;  %v214_v35 = vrot.slane %v212_v29, 1  ;;  %v1942_v45 = vld [vmem:[%s2515_s1 + $0x170] sm:$0xff]  ;;  %v1439_v46 = vld [vmem:[%s2226_s28 + $0x8] sm:$0xf]  ;;  %v169_v47 = vld [vmem:[%s2226_s28] sm:$0xf] }
  0x21   : > { %329 = vmatpush.bf16.msra.mxu1 %v1899_v13  ;;  %v1951_v48 = vld [vmem:[%s2515_s1 + $0x1b0] sm:$0xff]  ;;  %v1933_v50 = vld [vmem:[%s2515_s1 + $0x128] sm:$0xff]  ;;  %v1932_v54 = vld [vmem:[%s2515_s1 + $0x120] sm:$0xff] }
  0x22   : > { %409 = vmatpush.bf16.msra.mxu2 %v1915_v14  ;;  %v215_v43 = vor.u32 %v214_v35, %v210_v34  ;;  %v1959_v49 = vld [vmem:[%s2515_s1 + $0x1f0] sm:$0xff]  ;;  %v1941_v51 = vld [vmem:[%s2515_s1 + $0x168] sm:$0xff]  ;;  %v1940_v55 = vld [vmem:[%s2515_s1 + $0x160] sm:$0xff] }
  0x23   : > { %491 = vmatpush.bf16.msra.mxu3 %v1924_v15  ;;  %v1950_v52 = vld [vmem:[%s2515_s1 + $0x1a8] sm:$0xff]  ;;  %v1949_v56 = vld [vmem:[%s2515_s1 + $0x1a0] sm:$0xff]  ;;  %v1931_v58 = vld [vmem:[%s2515_s1 + $0x118] sm:$0xff] }
  0x24   : > { %269 = vmatpush.bf16.msra.mxu0 %v1906_v16  ;;  %v1958_v53 = vld [vmem:[%s2515_s1 + $0x1e8] sm:$0xff]  ;;  %v1957_v57 = vld [vmem:[%s2515_s1 + $0x1e0] sm:$0xff]  ;;  %v1939_v59 = vld [vmem:[%s2515_s1 + $0x158] sm:$0xff] }
  0x25   : > { %330 = vmatpush.bf16.msra.mxu1 %v1898_v17  ;;  %v1948_v60 = vld [vmem:[%s2515_s1 + $0x198] sm:$0xff]  ;;  %v1507_v62 = vld [vmem:[%s2226_s28 + $0x8] sm:$0xf]  ;;  %v1919_v63 = vld [vmem:[%s2226_s28 + $0x8] sm:$0x10] }
  0x26   : > { %410 = vmatpush.bf16.msra.mxu2 %v1914_v18  ;;  %v1956_v61 = vld [vmem:[%s2515_s1 + $0x1d8] sm:$0xff]  ;;  %v1657_v0 = vld [vmem:[%s2226_s28 + $0x10] sm:$0xf]  ;;  %v1944_v1 = vld [vmem:[%s2226_s28 + $0x10] sm:$0x10]  ;;  %v1508_v4 = vor.u32 %v1919_v63, %v1507_v62 }
  0x27   : > { %492 = vmatpush.bf16.msra.mxu3 %v1923_v19  ;;  %v1930_v2 = vld [vmem:[%s2515_s1 + $0x110] sm:$0xff]  ;;  %v2350_v7 = vor.u32 %v1944_v1, %v1657_v0  ;;  %v1929_v8 = vld [vmem:[%s2515_s1 + $0x108] sm:$0xff]  ;;  %v1928_v14 = vld [vmem:[%s2515_s1 + $0x100] sm:$0xff] }
  0x28   : > { %270 = vmatpush.bf16.msra.mxu0 %v1905_v22  ;;  %v1938_v3 = vld [vmem:[%s2515_s1 + $0x150] sm:$0xff]  ;;  %v1937_v9 = vld [vmem:[%s2515_s1 + $0x148] sm:$0xff]  ;;  %v527_v10 = vshll.u32 %v1508_v4, 16  ;;  %v1936_v15 = vld [vmem:[%s2515_s1 + $0x140] sm:$0xff]  ;;  %v525_v16 = vshrl.u32 %v1508_v4, 16  ;;  %v611_v29 = vrot.slane %v1508_v4, 1 }
  0x29   : > { %331 = vmatpush.bf16.msra.mxu1 %v1897_v23  ;;  %v1947_v5 = vld [vmem:[%s2515_s1 + $0x190] sm:$0xff]  ;;  %v1946_v11 = vld [vmem:[%s2515_s1 + $0x188] sm:$0xff]  ;;  %v782_v13 = vshll.u32 %v2350_v7, 16  ;;  %v1945_v18 = vld [vmem:[%s2515_s1 + $0x180] sm:$0xff]  ;;  %v780_v20 = vshrl.u32 %v2350_v7, 16  ;;  %v866_v0 = vrot.slane %v2350_v7, 1 }
  0x2a   : > { %411 = vmatpush.bf16.msra.mxu2 %v1913_v25  ;;  %v1955_v6 = vld [vmem:[%s2515_s1 + $0x1d0] sm:$0xff]  ;;  %v1954_v12 = vld [vmem:[%s2515_s1 + $0x1c8] sm:$0xff]  ;;  %v529_v17 = vrot.slane %v527_v10, 1  ;;  %v1953_v19 = vld [vmem:[%s2515_s1 + $0x1c0] sm:$0xff] }
  0x2b   : > { %493 = vmatpush.bf16.msra.mxu3 %v1922_v26  ;;  %v784_v21 = vrot.slane %v782_v13, 1  ;;  %v1968_v22 = vld [vmem:[%s2515_s1 + $0x238] sm:$0xff]  ;;  %v1966_v34 = vld [vmem:[%s2515_s1 + $0x228] sm:$0xff]  ;;  %v1978_v62 = vld [vmem:[%s2515_s1 + $0x280] sm:$0xff] }
  0x2c   : > { %271 = vmatpush.bf16.msra.mxu0 %v1904_v27  ;;  %v1977_v23 = vld [vmem:[%s2515_s1 + $0x278] sm:$0xff]  ;;  %v530_v26 = vor.u32 %v529_v17, %v525_v16  ;;  %v1589_v27 = vld [vmem:[%s2226_s28 + $0x10] sm:$0xf]  ;;  %v1975_v35 = vld [vmem:[%s2515_s1 + $0x268] sm:$0xff] }
  0x2d   : > { %332 = vmatpush.bf16.msra.mxu1 %v1896_v28  ;;  %v1985_v24 = vld [vmem:[%s2515_s1 + $0x2b8] sm:$0xff]  ;;  %v785_v28 = vor.u32 %v784_v21, %v780_v20  ;;  %v1986_v63 = vld [vmem:[%s2515_s1 + $0x2c0] sm:$0xff] }
  0x2e   : > { %412 = vmatpush.bf16.msra.mxu2 %v1912_v30  ;;  %v1993_v25 = vld [vmem:[%s2515_s1 + $0x2f8] sm:$0xff]  ;;  %v1967_v30 = vld [vmem:[%s2515_s1 + $0x230] sm:$0xff] }
  0x2f   : > { %494 = vmatpush.bf16.msra.mxu3 %v1921_v31  ;;  %v1976_v31 = vld [vmem:[%s2515_s1 + $0x270] sm:$0xff]  ;;  %v1739_v1 = vld [vmem:[%s2226_s28 + $0x18] sm:$0xf] }
  0x30   : > { %272 = vmatpush.bf16.msra.mxu0 %v1903_v32  ;;  %v1984_v32 = vld [vmem:[%s2515_s1 + $0x2b0] sm:$0xff] }
  0x31   : > { %333 = vmatpush.bf16.msra.mxu1 %v1895_v33  ;;  %v1992_v33 = vld [vmem:[%s2515_s1 + $0x2f0] sm:$0xff] }
  0x32   : > { %413 = vmatpush.bf16.msra.mxu2 %v1911_v36  ;;  %v1983_v36 = vld [vmem:[%s2515_s1 + $0x2a8] sm:$0xff] }
  0x33   : > { %495 = vmatpush.bf16.msra.mxu3 %v1920_v37  ;;  %273 = vmatmul.bf16.vlgmr.msra.gmra.mxu0 %v215_v43  ;;  %v1991_v37 = vld [vmem:[%s2515_s1 + $0x2e8] sm:$0xff]  ;;  %v1973_v43 = vld [vmem:[%s2515_s1 + $0x258] sm:$0xff] }
  0x34   : > { %580 = vmatpush.bf16.msrb.mxu0 %v1935_v38  ;;  %334 = vmatmul.bf16.vlgmr.msra.gmra.mxu1 %v169_v47  ;;  %v1965_v38 = vld [vmem:[%s2515_s1 + $0x220] sm:$0xff]  ;;  %v1969_v47 = vld [vmem:[%s2226_s28 + $0x18] sm:$0x10] }
  0x35   : > { %661 = vmatpush.bf16.msrb.mxu1 %v1943_v39  ;;  %414 = vmatmul.bf16.vlgmr.msra.gmra.mxu2 %v356_v42  ;;  %v1974_v39 = vld [vmem:[%s2515_s1 + $0x260] sm:$0xff]  ;;  %v1964_v42 = vld [vmem:[%s2515_s1 + $0x218] sm:$0xff] }
  0x36   : > { %743 = vmatpush.bf16.msrb.mxu2 %v1952_v40  ;;  %496 = vmatmul.bf16.vlgmr.msra.gmra.mxu3 %v1439_v46  ;;  %v1982_v40 = vld [vmem:[%s2515_s1 + $0x2a0] sm:$0xff]  ;;  %v1807_v46 = vld [vmem:[%s2226_s28 + $0x18] sm:$0xf] }
  0x37   : > { %835 = vmatpush.bf16.msrb.mxu3 %v1960_v41  ;;  %v1990_v41 = vld [vmem:[%s2515_s1 + $0x2e0] sm:$0xff] }
  0x38   : > { %581 = vmatpush.bf16.msrb.mxu0 %v1934_v44  ;;  %v1981_v44 = vld [vmem:[%s2515_s1 + $0x298] sm:$0xff] }
  0x39   : > { %662 = vmatpush.bf16.msrb.mxu1 %v1942_v45  ;;  %v1989_v45 = vld [vmem:[%s2515_s1 + $0x2d8] sm:$0xff] }
  0x3a   : > { %744 = vmatpush.bf16.msrb.mxu2 %v1951_v48  ;;  %v1963_v48 = vld [vmem:[%s2515_s1 + $0x210] sm:$0xff] }
  0x3b   : > { %836 = vmatpush.bf16.msrb.mxu3 %v1959_v49  ;;  %v1972_v49 = vld [vmem:[%s2515_s1 + $0x250] sm:$0xff] }
  0x3c   : > { %582 = vmatpush.bf16.msrb.mxu0 %v1933_v50  ;;  %v1808_v50 = vor.u32 %v1969_v47, %v1807_v46 }
  0x3d   : > { %663 = vmatpush.bf16.msrb.mxu1 %v1941_v51  ;;  %v1980_v51 = vld [vmem:[%s2515_s1 + $0x290] sm:$0xff] }
  0x3e   : > { %745 = vmatpush.bf16.msrb.mxu2 %v1950_v52  ;;  %v1988_v52 = vld [vmem:[%s2515_s1 + $0x2d0] sm:$0xff] }
  0x3f   : > { %837 = vmatpush.bf16.msrb.mxu3 %v1958_v53  ;;  %v1962_v53 = vld [vmem:[%s2515_s1 + $0x208] sm:$0xff] }
  0x40   : > { %583 = vmatpush.bf16.msrb.mxu0 %v1932_v54  ;;  %v1971_v54 = vld [vmem:[%s2515_s1 + $0x248] sm:$0xff] }
  0x41   : > { %664 = vmatpush.bf16.msrb.mxu1 %v1940_v55  ;;  %v1037_v55 = vshll.u32 %v1808_v50, 16 }
  0x42   : > { %746 = vmatpush.bf16.msrb.mxu2 %v1949_v56  ;;  %v1979_v56 = vld [vmem:[%s2515_s1 + $0x288] sm:$0xff] }
  0x43   : > { %838 = vmatpush.bf16.msrb.mxu3 %v1957_v57  ;;  %v1987_v57 = vld [vmem:[%s2515_s1 + $0x2c8] sm:$0xff] }
  0x44   : > { %584 = vmatpush.bf16.msrb.mxu0 %v1931_v58  ;;  %v1961_v58 = vld [vmem:[%s2515_s1 + $0x200] sm:$0xff] }
  0x45   : > { %665 = vmatpush.bf16.msrb.mxu1 %v1939_v59  ;;  %v1970_v59 = vld [vmem:[%s2515_s1 + $0x240] sm:$0xff] }
  0x46   : > { %747 = vmatpush.bf16.msrb.mxu2 %v1948_v60  ;;  %v1035_v60 = vshrl.u32 %v1808_v50, 16 }
  0x47   : > { %839 = vmatpush.bf16.msrb.mxu3 %v1956_v61  ;;  %v1039_v61 = vrot.slane %v1037_v55, 1 }
  0x48   : > { %585 = vmatpush.bf16.msrb.mxu0 %v1930_v2 }
  0x49   : > { %666 = vmatpush.bf16.msrb.mxu1 %v1938_v3  ;;  %v1040_v2 = vor.u32 %v1039_v61, %v1035_v60  ;;  %v1121_v3 = vrot.slane %v1808_v50, 1 }
  0x4a   : > { %748 = vmatpush.bf16.msrb.mxu2 %v1947_v5 }
  0x4b   : > { %840 = vmatpush.bf16.msrb.mxu3 %v1955_v6 }
  0x4c   : > { %586 = vmatpush.bf16.msrb.mxu0 %v1929_v8 }
  0x4d   : > { %667 = vmatpush.bf16.msrb.mxu1 %v1937_v9 }
  0x4e   : > { %749 = vmatpush.bf16.msrb.mxu2 %v1946_v11 }
  0x4f   : > { %841 = vmatpush.bf16.msrb.mxu3 %v1954_v12 }
  0x50   : > { %587 = vmatpush.bf16.msrb.mxu0 %v1928_v14 }
  0x51   : > { %668 = vmatpush.bf16.msrb.mxu1 %v1936_v15 }
  0x52   : > { %750 = vmatpush.bf16.msrb.mxu2 %v1945_v18 }
  0x53   : > { %842 = vmatpush.bf16.msrb.mxu3 %v1953_v19  ;;  %588 = vmatmul.bf16.vlgmr.msrb.gmra.mxu0 %v530_v26 }
  0x54   : > { %916 = vmatpush.bf16.msra.mxu0 %v1968_v22  ;;  %669 = vmatmul.bf16.vlgmr.msrb.gmra.mxu1 %v611_v29 }
  0x55   : > { %998 = vmatpush.bf16.msra.mxu1 %v1977_v23  ;;  %751 = vmatmul.bf16.vlgmr.msrb.gmra.mxu2 %v1589_v27 }
  0x56   : > { %1090 = vmatpush.bf16.msra.mxu2 %v1985_v24  ;;  %843 = vmatmul.bf16.vlgmr.msrb.gmra.mxu3 %v785_v28 }
  0x57   : > { %1171 = vmatpush.bf16.msra.mxu3 %v1993_v25 }
  0x58   : > { %917 = vmatpush.bf16.msra.mxu0 %v1967_v30 }
  0x59   : > { %999 = vmatpush.bf16.msra.mxu1 %v1976_v31 }
  0x5a   : > { %1091 = vmatpush.bf16.msra.mxu2 %v1984_v32 }
  0x5b   : > { %1172 = vmatpush.bf16.msra.mxu3 %v1992_v33 }
  0x5c   : > { %918 = vmatpush.bf16.msra.mxu0 %v1966_v34 }
  0x5d   : > { %1000 = vmatpush.bf16.msra.mxu1 %v1975_v35 }
  0x5e   : > { %1092 = vmatpush.bf16.msra.mxu2 %v1983_v36  ;;  %v2034_v36 = vld [vmem:[%s2516_s2] ss:$0 sm:$0xff] }
  0x5f   : > { %1173 = vmatpush.bf16.msra.mxu3 %v1991_v37 }
  0x60   : > { %919 = vmatpush.bf16.msra.mxu0 %v1965_v38 }
  0x61   : > { %1001 = vmatpush.bf16.msra.mxu1 %v1974_v39 }
  0x62   : > { %1093 = vmatpush.bf16.msra.mxu2 %v1982_v40 }
  0x63   : > { %1174 = vmatpush.bf16.msra.mxu3 %v1990_v41 }
  0x64   : > { %920 = vmatpush.bf16.msra.mxu0 %v1964_v42 }
  0x65   : > { %1002 = vmatpush.bf16.msra.mxu1 %v1973_v43 }
  0x66   : > { %1094 = vmatpush.bf16.msra.mxu2 %v1981_v44 }
  0x67   : > { %1175 = vmatpush.bf16.msra.mxu3 %v1989_v45 }
  0x68   : > { %921 = vmatpush.bf16.msra.mxu0 %v1963_v48 }
  0x69   : > { %1003 = vmatpush.bf16.msra.mxu1 %v1972_v49 }
  0x6a   : > { %1095 = vmatpush.bf16.msra.mxu2 %v1980_v51 }
  0x6b   : > { %1176 = vmatpush.bf16.msra.mxu3 %v1988_v52 }
  0x6c   : > { %922 = vmatpush.bf16.msra.mxu0 %v1962_v53 }
  0x6d   : > { %1004 = vmatpush.bf16.msra.mxu1 %v1971_v54 }
  0x6e   : > { %1096 = vmatpush.bf16.msra.mxu2 %v1979_v56 }
  0x6f   : > { %1177 = vmatpush.bf16.msra.mxu3 %v1987_v57 }
  0x70   : > { %923 = vmatpush.bf16.msra.mxu0 %v1961_v58 }
  0x71   : > { %1005 = vmatpush.bf16.msra.mxu1 %v1970_v59 }
  0x72   : > { %1097 = vmatpush.bf16.msra.mxu2 %v1978_v62 }
  0x73   : > { %1178 = vmatpush.bf16.msra.mxu3 %v1986_v63  ;;  %924 = vmatmul.bf16.vlgmr.msra.gmra.mxu0 %v866_v0 }
  0x74   : > { %1006 = vmatmul.bf16.vlgmr.msra.gmra.mxu1 %v1739_v1 }
  0x75   : > { %1098 = vmatmul.bf16.vlgmr.msra.gmra.mxu2 %v1040_v2 }
  0x76   : > { %1179 = vmatmul.bf16.vlgmr.msra.gmra.mxu3 %v1121_v3 }
  0xb0   : > { %v274_v4 = vpop.f32.mrf.mxu0 }
  0xb1   : > { %v335_v5 = vpop.f32.mrf.mxu1 }
  0xb2   : > { %v336_v14 = vadd.f32 %v335_v5, %v274_v4 }
  0xb8   : > { %v415_v6 = vpop.f32.mrf.mxu2  ;;  %v276_v9 = vpop.f32.mrf.mxu0 }
  0xb9   : > { %v497_v8 = vpop.f32.mrf.mxu3  ;;  %v337_v10 = vpop.f32.mrf.mxu1  ;;  %v419_v18 = vadd.f32 %v415_v6, %v336_v14 }
  0xbb   : > { %v501_v20 = vadd.f32 %v497_v8, %v419_v18 }
  0xc0   : > { %v417_v11 = vpop.f32.mrf.mxu2 }
  0xc1   : > { %v499_v12 = vpop.f32.mrf.mxu3 }
  0xd0   : > { %v589_v7 = vpop.f32.mrf.mxu0 }
  0xd1   : > { %v670_v13 = vpop.f32.mrf.mxu1  ;;  %v593_v23 = vadd.f32 %v589_v7, %v501_v20 }
  0xd3   : > { %v674_v24 = vadd.f32 %v670_v13, %v593_v23 }
  0xd8   : > { %v752_v15 = vpop.f32.mrf.mxu2  ;;  %v591_v17 = vpop.f32.mrf.mxu0 }
  0xd9   : > { %v844_v16 = vpop.f32.mrf.mxu3  ;;  %v672_v19 = vpop.f32.mrf.mxu1  ;;  %v756_v25 = vadd.f32 %v752_v15, %v674_v24 }
  0xdb   : > { %v848_v26 = vadd.f32 %v844_v16, %v756_v25 }
  0xe0   : > { %v754_v21 = vpop.f32.mrf.mxu2 }
  0xe1   : > { %v846_v22 = vpop.f32.mrf.mxu3 }
  0xf0   : > { %v925_v27 = vpop.f32.mrf.mxu0 }
  0xf1   : > { %v1007_v28 = vpop.f32.mrf.mxu1  ;;  %v929_v29 = vadd.f32 %v925_v27, %v848_v26 }
  0xf3   : > { %v1011_v30 = vadd.f32 %v1007_v28, %v929_v29 }
  0xf8   : > { %v1099_v31 = vpop.f32.mrf.mxu2  ;;  %v927_v34 = vpop.f32.mrf.mxu0 }
  0xf9   : > { %v1180_v32 = vpop.f32.mrf.mxu3  ;;  %v1103_v33 = vadd.f32 %v1099_v31, %v1011_v30  ;;  %v1009_v35 = vpop.f32.mrf.mxu1 }
  0xfb   : > { %v1184_v37 = vadd.f32 %v1180_v32, %v1103_v33 }
  0xfd   : > { %v1189_v38 = vadd.f32 %v2034_v36, %v1184_v37 }
  0xff   : > { %v1190_v39 = vmax.f32 %v1189_v38, 0.0 }
 0x100   : > { %v1101_v40 = vpop.f32.mrf.mxu2 }
 0x101   : > { %v1182_v41 = vpop.f32.mrf.mxu3  ;;  %1191 = vxpose.xlu0.b32.start.end [1/1] (short) (narrow) %v1190_v39, 8 }
 0x1a5   : > { %v1207_v42 = vpop.trf.xlu0 }
 0x1a6   : > { %1224 = vst.msk [vmem:[%s163_s17] sm:$0xff] %vm1223_vm0, %v1207_v42 }
 0x1a7   : > { %2062 = shalt.err (!%p2059_p3)
}
 0x1a8   : > { %1994 = dma.vmem_to_hbm [thread:$0]  (%p2157_p5), %s1239_s19, 128, %s1241_s20, %s1226_s24  }
 0x1a9 PF: > { %p2000_p4 = scmp.ge.s32.totalorder %s2097_s15, 2  ;;  %s1252_s28 = sand.u32 1, %s2085_s12  }
 0x1aa   : > { %s1253_s5 = scalar_lea.sflag [#allocation3], %s1252_s28 }
 0x1ab   : > { %p1997_p7 = pnand %p2000_p4, %p2161_p6 }
 0x1ad   : > { %p1998_p8 = pneg %p1997_p7 }
 0x1af   : > { %2080 = dma.done.wait (%p1998_p8), %s1253_s5, 128  }
 0x1b0   : > { %2082 = vsyncadd (%p1998_p8), %s1253_s5, 4294967168  ;;  %p13_p9 = scmp.ge.s32.totalorder %s2144_s18, 4   ;;  %s2520_s12 = smov %s2089_s13 }
 0x1b1   : > { %s2521_s13 = smov %s2093_s14  ;;  %s2522_s14 = smov %s2155_s21 }
 0x1b2   : > { %s2523_s15 = smov %s2144_s18  ;;  %15 = sbr.rel (!%p13_p9) target bundleno = 3 (0x3), region = 81 }
 0x1b7   :  { %1259 = vsyncpa [#allocation3], 1 }
 0x1b8   :  { %1261 = vsyncpa [#allocation3 + $0x1], 1 }

</bundles_post_ra>
